<compile_context>
chip_gen: v7x
topology: tpu7x:2x2x1
jax: 0.10.0
libtpu: 0.0.40
codegen_flags: <defaults>
</compile_context>

<pallas_src>
import functools

import jax
import jax.numpy as jnp
import numpy as np
from jax.experimental import pallas as pl
from jax.experimental.pallas import tpu as pltpu

_LANES = 128
_MAX_TILE_ROWS = 1024   # ~0.5 MiB/input block; ~2 MiB total with double buffering


def _bce_kernel(pred_ref, targ_ref, out_ref, acc_ref, *, n_valid, rem, smoothing):
    pid = pl.program_id(0)
    nprog = pl.num_programs(0)

    @pl.when(pid == 0)
    def _init():
        acc_ref[...] = jnp.zeros_like(acc_ref)

    p = pred_ref[...].astype(jnp.float32)
    t = targ_ref[...].astype(jnp.float32)

    # label smoothing (bce_loss._smooth)
    t = t * (1.0 - smoothing) + 0.5 * smoothing

    # F.binary_cross_entropy with PyTorch's log clamp at -100, fused form:
    #   loss = -(t*log(p) + (1-t)*log(1-p)) = -(log(1-p) + t*(log(p) - log(1-p)))
    log_p = jnp.maximum(jnp.log(p), -100.0)
    log_1mp = jnp.maximum(jnp.log(1.0 - p), -100.0)
    loss = -(log_1mp + t * (log_p - log_1mp))

    is_last = pid == nprog - 1

    # Hot path: all tiles except the last are fully valid -> plain VPU accumulate.
    @pl.when(jnp.logical_not(is_last))
    def _accum():
        acc_ref[...] += loss

    # Last tile: mask out padding / out-of-range rows (tile-relative indices,
    # so no int32 overflow), then finalize: reduce, divide by n, scalar store.
    @pl.when(is_last)
    def _accum_masked_and_finalize():
        rows_t, cols = loss.shape
        ridx = jax.lax.broadcasted_iota(jnp.int32, (rows_t, cols), 0)
        cidx = jax.lax.broadcasted_iota(jnp.int32, (rows_t, cols), 1)
        flat = ridx * cols + cidx                      # index within this tile
        acc_ref[...] += jnp.where(flat < rem, loss, 0.0)
        out_ref[0, 0] = jnp.sum(acc_ref[...]) / jnp.float32(n_valid)


def bce_loss_pallas(y_pred, y_true, *, smoothing=0.05, reduction="mean"):
    """Pallas implementation of bce_loss.forward (reduction='mean')."""
    assert reduction == "mean"  # TODO(synk): 'sum'/'none' reductions and weight not implemented
    assert y_pred.shape == y_true.shape

    n = int(np.prod(y_pred.shape))
    rows = (n + _LANES - 1) // _LANES
    pad = rows * _LANES - n

    pf = y_pred.reshape(-1)
    tf = y_true.reshape(-1)
    if pad:  # only when n % 128 != 0; padded values are masked in-kernel
        pf = jnp.pad(pf, (0, pad), constant_values=0.5)
        tf = jnp.pad(tf, (0, pad), constant_values=0.5)
    pf = pf.reshape(rows, _LANES)
    tf = tf.reshape(rows, _LANES)

    tile_r = min(rows, _MAX_TILE_ROWS)
    grid = (rows + tile_r - 1) // tile_r
    # number of valid elements inside the last tile (tile-relative)
    rem = n - (grid - 1) * tile_r * _LANES

    kernel = functools.partial(
        _bce_kernel, n_valid=n, rem=int(rem), smoothing=float(smoothing))

    out = pl.pallas_call(
        kernel,
        out_shape=jax.ShapeDtypeStruct((1, 1), jnp.float32),
        grid_spec=pltpu.PrefetchScalarGridSpec(
            num_scalar_prefetch=0,
            grid=(grid,),
            in_specs=[
                pl.BlockSpec((tile_r, _LANES), lambda i: (i, 0)),
                pl.BlockSpec((tile_r, _LANES), lambda i: (i, 0)),
            ],
            out_specs=pl.BlockSpec(memory_space=pltpu.SMEM),
            scratch_shapes=[pltpu.VMEM((tile_r, _LANES), jnp.float32)],
        ),
        compiler_params=pltpu.CompilerParams(
            dimension_semantics=("arbitrary",)),
    )(pf, tf)
    return out[0, 0]


def _bce_loss_ref(y_pred, y_true, *, smoothing=0.05):
    t = y_true.astype(jnp.float32) * (1.0 - smoothing) + 0.5 * smoothing
    p = y_pred.astype(jnp.float32)
    log_p = jnp.maximum(jnp.log(p), -100.0)
    log_1mp = jnp.maximum(jnp.log(1.0 - p), -100.0)
    return jnp.mean(-(t * log_p + (1.0 - t) * log_1mp))


if __name__ == "__main__":
    key = jax.random.PRNGKey(0)
    k1, k2 = jax.random.split(key)

    B, C, H, W = 2, 1, 16, 16   # NCHW, matching the (B, 1, H, W) convention used upstream
    # y_pred must be probabilities in (0, 1) for F.binary_cross_entropy
    y_pred = jax.nn.sigmoid(jax.random.normal(k1, (B, C, H, W), dtype=jnp.float32))
    y_true = (jax.random.uniform(k2, (B, C, H, W)) > 0.5).astype(jnp.float32)

    out = jax.block_until_ready(bce_loss_pallas(y_pred, y_true, smoothing=0.05))
    ref = jax.block_until_ready(_bce_loss_ref(y_pred, y_true, smoothing=0.05))

    assert np.allclose(np.asarray(out), np.asarray(ref), rtol=1e-5, atol=1e-6), (out, ref)
    print("KERNEL_OK")
</pallas_src>

<mosaic_0001>
module attributes {stable_mosaic.version = 11 : i64} {
  func.func @_bce_kernel(%arg0: i32, %arg1: memref<4x128xf32, #tpu.memory_space<vmem>>, %arg2: memref<4x128xf32, #tpu.memory_space<vmem>>, %arg3: memref<1x1xf32, #tpu.memory_space<smem>>, %arg4: memref<4x128xf32, #tpu.memory_space<vmem>>) attributes {dimension_semantics = [#tpu.dimension_semantics<arbitrary>], iteration_bounds = array<i64: 1>, scalar_prefetch = 0 : i64, scratch_operands = 1 : i64, tpu.core_type = #tpu.core_type<tc>, window_params = [{transform_indices = @transform_0, window_bounds = array<i64: 4, 128>}, {transform_indices = @transform_1, window_bounds = array<i64: 4, 128>}, {transform_indices = @transform_2, window_bounds = array<i64: 1, 1>}]} {
    %c0_i32 = arith.constant 0 : i32
    %0 = arith.cmpi eq, %arg0, %c0_i32 : i32
    %1 = arith.extui %0 : i1 to i32
    %c0_i32_0 = arith.constant 0 : i32
    %2 = arith.cmpi ne, %1, %c0_i32_0 : i32
    scf.if %2 {
      %cst_12 = arith.constant 0.000000e+00 : f32
      %28 = vector.broadcast %cst_12 : f32 to vector<4x128xf32>
      %c0_13 = arith.constant 0 : index
      %c0_14 = arith.constant 0 : index
      %29 = vector.load %arg4[%c0_13, %c0_14] : memref<4x128xf32, #tpu.memory_space<vmem>>, vector<4x128xf32>
      tpu.vector_store %arg4[%c0_13, %c0_14], %28 {strides = array<i32>} : memref<4x128xf32, #tpu.memory_space<vmem>>, vector<4x128xf32>,
    } else {
    }
    %c0 = arith.constant 0 : index
    %c0_1 = arith.constant 0 : index
    %3 = vector.load %arg1[%c0, %c0_1] : memref<4x128xf32, #tpu.memory_space<vmem>>, vector<4x128xf32>
    %c0_2 = arith.constant 0 : index
    %c0_3 = arith.constant 0 : index
    %4 = vector.load %arg2[%c0_2, %c0_3] : memref<4x128xf32, #tpu.memory_space<vmem>>, vector<4x128xf32>
    %cst = arith.constant 0.949999988 : f32
    %5 = vector.broadcast %cst : f32 to vector<4x128xf32>
    %6 = arith.mulf %4, %5 : vector<4x128xf32>
    %cst_4 = arith.constant 2.500000e-02 : f32
    %7 = vector.broadcast %cst_4 : f32 to vector<4x128xf32>
    %8 = arith.addf %6, %7 : vector<4x128xf32>
    %9 = math.log %3 : vector<4x128xf32>
    %cst_5 = arith.constant -1.000000e+02 : f32
    %10 = vector.broadcast %cst_5 : f32 to vector<4x128xf32>
    %11 = arith.maximumf %9, %10 : vector<4x128xf32>
    %cst_6 = arith.constant 1.000000e+00 : f32
    %12 = vector.broadcast %cst_6 : f32 to vector<4x128xf32>
    %13 = arith.subf %12, %3 : vector<4x128xf32>
    %14 = math.log %13 : vector<4x128xf32>
    %cst_7 = arith.constant -1.000000e+02 : f32
    %15 = vector.broadcast %cst_7 : f32 to vector<4x128xf32>
    %16 = arith.maximumf %14, %15 : vector<4x128xf32>
    %17 = arith.subf %11, %16 : vector<4x128xf32>
    %18 = arith.mulf %8, %17 : vector<4x128xf32>
    %19 = arith.addf %16, %18 : vector<4x128xf32>
    %cst_8 = arith.constant 0.000000e+00 : f32
    %20 = vector.broadcast %cst_8 : f32 to vector<4x128xf32>
    %21 = arith.subf %20, %19 : vector<4x128xf32>
    %c0_i32_9 = arith.constant 0 : i32
    %22 = arith.cmpi eq, %arg0, %c0_i32_9 : i32
    %true = arith.constant true
    %23 = arith.xori %22, %true : i1
    %24 = arith.extui %23 : i1 to i32
    %c0_i32_10 = arith.constant 0 : i32
    %25 = arith.cmpi ne, %24, %c0_i32_10 : i32
    scf.if %25 {
      %c0_12 = arith.constant 0 : index
      %c0_13 = arith.constant 0 : index
      %28 = vector.load %arg4[%c0_12, %c0_13] : memref<4x128xf32, #tpu.memory_space<vmem>>, vector<4x128xf32>
      %29 = arith.addf %28, %21 : vector<4x128xf32>
      %c0_14 = arith.constant 0 : index
      %c0_15 = arith.constant 0 : index
      %30 = vector.load %arg4[%c0_14, %c0_15] : memref<4x128xf32, #tpu.memory_space<vmem>>, vector<4x128xf32>
      tpu.vector_store %arg4[%c0_14, %c0_15], %29 {strides = array<i32>} : memref<4x128xf32, #tpu.memory_space<vmem>>, vector<4x128xf32>,
    } else {
    }
    %26 = arith.extui %22 : i1 to i32
    %c0_i32_11 = arith.constant 0 : i32
    %27 = arith.cmpi ne, %26, %c0_i32_11 : i32
    scf.if %27 {
      %28 = tpu.iota {dimensions = array<i32: 0>} : vector<4x128xi32>
      %29 = tpu.iota {dimensions = array<i32: 1>} : vector<4x128xi32>
      %c128_i32 = arith.constant 128 : i32
      %30 = vector.broadcast %c128_i32 : i32 to vector<4x128xi32>
      %31 = arith.muli %28, %30 : vector<4x128xi32>
      %32 = arith.addi %31, %29 : vector<4x128xi32>
      %c0_12 = arith.constant 0 : index
      %c0_13 = arith.constant 0 : index
      %33 = vector.load %arg4[%c0_12, %c0_13] : memref<4x128xf32, #tpu.memory_space<vmem>>, vector<4x128xf32>
      %c512_i32 = arith.constant 512 : i32
      %34 = vector.broadcast %c512_i32 : i32 to vector<4x128xi32>
      %35 = arith.cmpi slt, %32, %34 : vector<4x128xi32>
      %cst_14 = arith.constant 0.000000e+00 : f32
      %36 = vector.broadcast %cst_14 : f32 to vector<4x128xf32>
      %37 = arith.select %35, %21, %36 : vector<4x128xi1>, vector<4x128xf32>
      %38 = arith.addf %33, %37 : vector<4x128xf32>
      %c0_15 = arith.constant 0 : index
      %c0_16 = arith.constant 0 : index
      %39 = vector.load %arg4[%c0_15, %c0_16] : memref<4x128xf32, #tpu.memory_space<vmem>>, vector<4x128xf32>
      tpu.vector_store %arg4[%c0_15, %c0_16], %38 {strides = array<i32>} : memref<4x128xf32, #tpu.memory_space<vmem>>, vector<4x128xf32>,
      %c0_17 = arith.constant 0 : index
      %c0_18 = arith.constant 0 : index
      %40 = vector.load %arg4[%c0_17, %c0_18] : memref<4x128xf32, #tpu.memory_space<vmem>>, vector<4x128xf32>
      %41 = vector.shape_cast %40 : vector<4x128xf32> to vector<1x4x128xf32>
      %cst_19 = arith.constant dense<0.000000e+00> : vector<1xf32>
      %42 = vector.multi_reduction <add>, %41, %cst_19 [1, 2] : vector<1x4x128xf32> to vector<1xf32>
      %43 = vector.shape_cast %42 : vector<1xf32> to vector<1x1x1xf32>
      %44 = vector.extract %43[0, 0, 0] : f32 from vector<1x1x1xf32>
      %cst_20 = arith.constant 5.120000e+02 : f32
      %45 = arith.divf %44, %cst_20 : f32
      %c0_21 = arith.constant 0 : index
      %c0_22 = arith.constant 0 : index
      %46 = memref.load %arg3[%c0_21, %c0_22] : memref<1x1xf32, #tpu.memory_space<smem>>
      memref.store %45, %arg3[%c0_21, %c0_22] : memref<1x1xf32, #tpu.memory_space<smem>>
    } else {
    }
    return
  }
  func.func @transform_0(%arg0: i32) -> (i32, i32) {
    %c0_i32 = arith.constant 0 : i32
    %c0_i32_0 = arith.constant 0 : i32
    return %arg0, %c0_i32 : i32, i32
  }
  func.func @transform_1(%arg0: i32) -> (i32, i32) {
    %c0_i32 = arith.constant 0 : i32
    %c0_i32_0 = arith.constant 0 : i32
    return %arg0, %c0_i32 : i32, i32
  }
  func.func @transform_2(%arg0: i32) -> (i32, i32) {
    %c0_i32 = arith.constant 0 : i32
    %c0_i32_0 = arith.constant 0 : i32
    %c0_i32_1 = arith.constant 0 : i32
    return %c0_i32, %c0_i32_0 : i32, i32
  }
}

</mosaic_0001>

<bundles_post_ra>
// kernel: tpu_custom_call.1
= control target key start
LH: loop header
LB: loop body
LE: loop exit
PB: predicated region body
PF: predicated region fallthrough
CT: control target
= control target key end

     0   :  { %7 = vsyncpa [#allocation4], 0  ;;  %s234_s0 = inlined_call_operand.hbm [shape: f32[4,128], index: 0, kind: input, shape index: {}]   ;;  %s235_s1 = inlined_call_operand.hbm [shape: f32[4,128], index: 1, kind: input, shape index: {}]   ;;  %s236_s2 = inlined_call_operand.hbm [shape: f32[1,1], index: 2, kind: output, shape index: {}]  }
   0x1   :  { %8 = vsyncpa [#allocation7], 0 }
   0x2   :  { %9 = vsyncpa [#allocation5], 0  ;;  %s179_s9 = smov [#allocation3]   ;;  %s180_s11 = smov [#allocation6]  }
   0x3   :  { %s16_s10 = sshll.u32 %s179_s9, 4  ;;  %s26_s12 = sshll.u32 %s180_s11, 4  ;;  %s17_s10 = int_to_ptr.vmem [resolvable:$true] %s16_s10  ;;  %s27_s12 = int_to_ptr.vmem [resolvable:$true] %s26_s12 }
   0x4   :  { %s119_s15 = scalar_lea.hbm %s234_s0, 64 }
   0x5   :  { %p120_p0 = scmp.ne.s32.totalorder %s234_s0, %s119_s15  ;;  %p123_p1 = scmp.lt.u32.totalorder %s119_s15, %s234_s0 }
   0x7   :  { %p125_p2 = pnand %p123_p1, %p120_p0 }
   0x9   :  { %128 = shalt.err (!%p125_p2)
}
   0xa   :  { %s129_s20 = scalar_lea.vmem %s17_s10, 64  ;;  %p134_p4 = scmp.lt.s32.totalorder %s17_s10, %s17_s10 }
   0xb   :  { %p130_p3 = scmp.ne.s32.totalorder %s17_s10, %s129_s20  ;;  %p135_p5 = scmp.lt.s32.totalorder %s129_s20, %s129_s20 }
   0xd   :  { %p136_p6 = por %p135_p5, %p134_p4 }
   0xf   :  { %p137_p7 = pnand %p136_p6, %p130_p3 }
  0x11   :  { %140 = shalt.err (!%p137_p7)
}
  0x12   :  { %19 = dma.hbm_to_vmem [thread:$0]  %s234_s0, 64, %s17_s10, [#allocation4]  }
  0x13   :  { %s141_s25 = scalar_lea.hbm %s235_s1, 64 }
  0x14   :  { %p142_p8 = scmp.ne.s32.totalorder %s235_s1, %s141_s25  ;;  %p145_p9 = scmp.lt.u32.totalorder %s141_s25, %s235_s1 }
  0x16   :  { %p147_p10 = pnand %p145_p9, %p142_p8 }
  0x18   :  { %150 = shalt.err (!%p147_p10)
}
  0x19   :  { %s151_s30 = scalar_lea.vmem %s27_s12, 64  ;;  %p156_p12 = scmp.lt.s32.totalorder %s27_s12, %s27_s12 }
  0x1a   :  { %p152_p11 = scmp.ne.s32.totalorder %s27_s12, %s151_s30  ;;  %p157_p13 = scmp.lt.s32.totalorder %s151_s30, %s151_s30 }
  0x1c   :  { %p158_p0 = por %p157_p13, %p156_p12 }
  0x1e   :  { %p159_p1 = pnand %p158_p0, %p152_p11 }
  0x20   :  { %162 = shalt.err (!%p159_p1)
}
  0x21   :  { %29 = dma.hbm_to_vmem [thread:$0]  %s235_s1, 64, %s27_s12, [#allocation7]  }
  0x22   :  { %173 = dma.done.wait [#allocation4], 64  }
  0x23   :  { %174 = vsyncadd [#allocation4], 4294967232 }
  0x24   :  { %175 = dma.done.wait [#allocation7], 64  }
  0x25   :  { %176 = vsyncadd [#allocation7], 4294967232  ;;  %v181_v0 = vmov 0.0   ;;  %v41_v1 = vld [vmem:[#allocation3] sm:$0xf]  ;;  %v66_v3 = vlaneseq  ;;  %vm78_vm1 = vcmask 1043456  }
  0x26   :  { %40 = vst [vmem:[#allocation2] sm:$0xf] %v181_v0  ;;  %115 = vlog2.f32 %v41_v1  ;;  %v48_v2 = vsub.f32 1.0, %v41_v1  ;;  %v42_v4 = vld [vmem:[#allocation6] sm:$0xf]  ;;  %s163_s7 = scalar_lea.hbm %s236_s2, 16 }
  0x27   :  { %v67_v6 = vshrl.u32 %v66_v3, 7  ;;  %v43_v7 = vmul.f32 0.95, %v42_v4  ;;  %v69_v12 = vand.u32 127, %v66_v3  ;;  %p164_p2 = scmp.ne.s32.totalorder %s236_s2, %s163_s7  ;;  %p167_p3 = scmp.lt.u32.totalorder %s163_s7, %s236_s2 }
  0x28   :  { %117 = vlog2.f32 %v48_v2 }
  0x29   :  { %v70_v13 = vmul.u32 128, %v67_v6  ;;  %v44_v14 = vadd.f32 0.025, %v43_v7  ;;  %p169_p4 = pnand %p167_p3, %p164_p2 }
  0x2b   :  { %v71_v17 = vadd.s32 %v70_v13, %v69_v12 }
  0x2d   :  { %vm73_vm0 = vcmp.lt.s32.totalorder %v71_v17, 512  ;;  %v72_v21 = vld [vmem:[#allocation2] sm:$0xf] }
  0x30   :  { %v116_v5 = vpop.eup %115 }
  0x31   :  { %v46_v8 = vmul.f32 0.6931472, %v116_v5 }
  0x32   :  { %v118_v9 = vpop.eup %117 }
  0x33   :  { %v47_v10 = vmax.f32 %v46_v8, -100.0  ;;  %v50_v11 = vmul.f32 0.6931472, %v118_v9 }
  0x35   :  { %v51_v15 = vmax.f32 %v50_v11, -100.0 }
  0x37   :  { %v52_v16 = vsub.f32 %v47_v10, %v51_v15 }
  0x39   :  { %v53_v18 = vmul.f32 %v52_v16, %v44_v14 }
  0x3b   :  { %v54_v19 = vadd.f32 %v53_v18, %v51_v15 }
  0x3d   :  { %v55_v20 = vsub.f32 0.0, %v54_v19 }
  0x3f   :  { %v74_v22 = vsel %vm73_vm0, %v55_v20, 0.0 }
  0x40   :  { %v75_v23 = vadd.f32 %v74_v22, %v72_v21 }
  0x42   :  { %76 = vst [vmem:[#allocation2] sm:$0xf] %v75_v23 }
  0x49   :  { %v77_v24 = vld [vmem:[#allocation2] sm:$0xf] }
  0x4a   :  { %v79_v25 = vsel %vm78_vm1, %v77_v24, 0.0 }
  0x4b   :  { %80 = vadd.xlane.f32.xlu0 %v79_v25 }
  0xd8   :  { %v81_v26 = vpop.xlane.xlu0 %80 }
  0xd9   :  { %v82_v27 = vrot.slane %v81_v26, 4 }
  0xdb   :  { %v83_v28 = vadd.f32 %v82_v27, %v81_v26 }
  0xdd   :  { %v84_v29 = vrot.slane %v83_v28, 2 }
  0xdf   :  { %v85_v30 = vadd.f32 %v84_v29, %v83_v28 }
  0xe1   :  { %v86_v31 = vrot.slane %v85_v30, 1 }
  0xe3   :  { %v87_v32 = vadd.f32 %v86_v31, %v85_v30 }
  0xe5   :  { %109 = vpush %v87_v32 }
 0x116   :  { %s110_s1 = spop %109 }
 0x117   :  { %s91_s4 = smul.f32 0.001953125, %s110_s1 }
 0x119   :  { %93 = sst [smem:[#allocation8]] %s91_s4 }
 0x11a   :  { %172 = shalt.err (!%p169_p4)
}
 0x11b   :  { %s182_s12 = smov [#allocation8]  }
 0x11c   :  { %101 = dma.smem_to_hbm %s182_s12, 16, %s236_s2, [#allocation5]  }
 0x11d   :  { %177 = dma.done.wait [#allocation5], 16  }
 0x11e   :  { %178 = vsyncadd [#allocation5], 4294967280 }
 0x11f   :  { %105 = sfence }
 0x120   :  { %106 = vsyncpa [#allocation4], 1 }
 0x121   :  { %107 = vsyncpa [#allocation7], 1 }
 0x122   :  { %108 = vsyncpa [#allocation5], 1 }

</bundles_post_ra>
